<compile_context>
chip_gen: v6e
topology: v6e:2x2x1
jax: 0.10.0
libtpu: 0.0.40
codegen_flags: <defaults>
</compile_context>

<pallas_src>
from functools import partial

import jax
import jax.numpy as jnp
import numpy as np
from jax.experimental import pallas as pl
from jax.experimental.pallas import tpu as pltpu


def _make_dice_partial_kernel(c, tm, hw, needs_mask):
    def kernel(x_ref, t_ref, inter_ref, denom_ref):
        logits = x_ref[0].astype(jnp.float32)   # (C, TM)
        tgt = t_ref[0].astype(jnp.float32)      # (C, TM)

        if needs_mask:
            col = pl.program_id(1) * tm + jax.lax.broadcasted_iota(
                jnp.int32, (c, tm), 1)
            valid = col < hw
            logits = jnp.where(valid, logits, 0.0)
            tgt = jnp.where(valid, tgt, 0.0)

        # Per-pixel softmax over the channel axis (axis 0 of the block).
        mx = jnp.max(logits, axis=0, keepdims=True)
        e = jnp.exp(logits - mx)
        inv = pl.reciprocal(jnp.sum(e, axis=0, keepdims=True), approx=True)
        p = e * inv
        if needs_mask:
            p = jnp.where(valid, p, 0.0)

        # Per-channel partial reductions along the lane axis -> (C, 1).
        inter_ref[0, 0] = jnp.sum(p * tgt, axis=-1, keepdims=True)
        denom_ref[0, 0] = (jnp.sum(p, axis=-1, keepdims=True)
                           + jnp.sum(tgt, axis=-1, keepdims=True))

    return kernel


@partial(jax.jit, static_argnames=("tile_m",))
def dice_loss(output, target, *, tile_m=8192):
    """output, target: (N, C, H, W) float arrays (NCHW, matching PyTorch)."""
    assert output.shape == target.shape, "'input' and 'target' must have the same shape"
    n, c, h, w = output.shape
    hw = h * w

    # Free reshape (no transpose: NCHW is already channel-major per batch element).
    x3 = output.reshape(n, c, hw)
    t3 = target.reshape(n, c, hw)

    # Tile the spatial axis. Cap TM so double-buffered f32 inputs (2 inputs x
    # 2 buffers) stay well under the smallest scoped-VMEM default (16 MiB v5e).
    budget_bytes = 8 * 1024 * 1024
    max_tm = max(128, (budget_bytes // (c * 4 * 2 * 2)) // 128 * 128)
    tm = max(128, (min(tile_m, max_tm) // 128) * 128)
    if hw <= tm:
        tm = hw                       # full-extent block: no 128-divisibility needed
        grid_m = 1
        needs_mask = False
    else:
        grid_m = pl.cdiv(hw, tm)
        needs_mask = (hw % tm) != 0

    kernel = _make_dice_partial_kernel(c, tm, hw, needs_mask)

    part_shape = jax.ShapeDtypeStruct((n, grid_m, c, 1), jnp.float32)
    inter_parts, denom_parts = pl.pallas_call(
        kernel,
        out_shape=(part_shape, part_shape),
        grid=(n, grid_m),
        in_specs=[
            pl.BlockSpec((1, c, tm), lambda ni, mi: (ni, 0, mi)),
            pl.BlockSpec((1, c, tm), lambda ni, mi: (ni, 0, mi)),
        ],
        out_specs=(
            pl.BlockSpec((1, 1, c, 1), lambda ni, mi: (ni, mi, 0, 0)),
            pl.BlockSpec((1, 1, c, 1), lambda ni, mi: (ni, mi, 0, 0)),
        ),
        compiler_params=pltpu.CompilerParams(
            dimension_semantics=("parallel", "parallel"),
        ),
    )(x3, t3)

    # Tiny final reduction / mean in plain JAX (N * grid_m * C floats).
    intersect = jnp.sum(inter_parts, axis=(0, 1, 3))   # (C,)
    denom = jnp.sum(denom_parts, axis=(0, 1, 3))       # (C,)
    return 1.0 - jnp.mean(intersect / denom)


def _dice_loss_ref(output, target):
    """Pure-JAX reference mirroring the PyTorch forward."""
    c = output.shape[1]
    p = jax.nn.softmax(output, axis=1)
    p_flat = jnp.transpose(p, (1, 0, 2, 3)).reshape(c, -1)
    t_flat = jnp.transpose(target, (1, 0, 2, 3)).reshape(c, -1)
    intersect = jnp.sum(p_flat * t_flat, axis=-1)
    denom = jnp.sum(p_flat + t_flat, axis=-1)
    return 1.0 - jnp.mean(intersect / denom)


if __name__ == "__main__":
    key = jax.random.PRNGKey(0)
    k1, k2, k3, k4 = jax.random.split(key, 4)

    # Tolerance note: approx=True reciprocal (EUP) is used per perf feedback; it
    # trades a small relative error in the softmax normalization for VALU headroom.
    RTOL, ATOL = 2e-3, 1e-4

    # Case 1: small NCHW shapes, single block per batch element.
    N, C, H, W = 2, 4, 16, 16
    logits = jax.random.normal(k1, (N, C, H, W), dtype=jnp.float32)
    labels = jax.random.randint(k2, (N, H, W), 0, C)
    target = jax.nn.one_hot(labels, C, axis=1, dtype=jnp.float32)  # (N, C, H, W)

    loss = jax.block_until_ready(dice_loss(logits, target))
    ref = jax.block_until_ready(_dice_loss_ref(logits, target))
    np.testing.assert_allclose(np.asarray(loss), np.asarray(ref), rtol=RTOL, atol=ATOL)

    # Case 2: odd spatial size + small forced tile to exercise the remainder mask.
    N2, C2, H2, W2 = 2, 4, 23, 23
    logits2 = jax.random.normal(k3, (N2, C2, H2, W2), dtype=jnp.float32)
    labels2 = jax.random.randint(k4, (N2, H2, W2), 0, C2)
    target2 = jax.nn.one_hot(labels2, C2, axis=1, dtype=jnp.float32)

    loss2 = jax.block_until_ready(dice_loss(logits2, target2, tile_m=128))
    ref2 = jax.block_until_ready(_dice_loss_ref(logits2, target2))
    np.testing.assert_allclose(np.asarray(loss2), np.asarray(ref2), rtol=RTOL, atol=ATOL)

    print("KERNEL_OK")
</pallas_src>

<mosaic_0001>
module attributes {stable_mosaic.version = 11 : i64} {
  func.func @kernel(%arg0: i32, %arg1: i32, %arg2: memref<1x4x256xf32, #tpu.memory_space<vmem>>, %arg3: memref<1x4x256xf32, #tpu.memory_space<vmem>>, %arg4: memref<1x1x4x1xf32, #tpu.memory_space<vmem>>, %arg5: memref<1x1x4x1xf32, #tpu.memory_space<vmem>>) attributes {dimension_semantics = [#tpu.dimension_semantics<parallel>, #tpu.dimension_semantics<parallel>], iteration_bounds = array<i64: 2, 1>, scalar_prefetch = 0 : i64, scratch_operands = 0 : i64, tpu.core_type = #tpu.core_type<tc>, window_params = [{transform_indices = @transform_0, window_bounds = array<i64: 1, 4, 256>}, {transform_indices = @transform_1, window_bounds = array<i64: 1, 4, 256>}, {transform_indices = @transform_2, window_bounds = array<i64: 1, 1, 4, 1>}, {transform_indices = @transform_3, window_bounds = array<i64: 1, 1, 4, 1>}]} {
    %c0 = arith.constant 0 : index
    %c0_0 = arith.constant 0 : index
    %c0_1 = arith.constant 0 : index
    %0 = vector.load %arg2[%c0, %c0_0, %c0_1] : memref<1x4x256xf32, #tpu.memory_space<vmem>>, vector<1x4x256xf32>
    %1 = vector.shape_cast %0 : vector<1x4x256xf32> to vector<4x256xf32>
    %c0_2 = arith.constant 0 : index
    %c0_3 = arith.constant 0 : index
    %c0_4 = arith.constant 0 : index
    %2 = vector.load %arg3[%c0_2, %c0_3, %c0_4] : memref<1x4x256xf32, #tpu.memory_space<vmem>>, vector<1x4x256xf32>
    %3 = vector.shape_cast %2 : vector<1x4x256xf32> to vector<4x256xf32>
    %cst = arith.constant dense<0xFF800000> : vector<256xf32>
    %4 = vector.multi_reduction <maximumf>, %1, %cst [0] : vector<4x256xf32> to vector<256xf32>
    %5 = vector.shape_cast %4 : vector<256xf32> to vector<1x256xf32>
    %6 = vector.broadcast %5 : vector<1x256xf32> to vector<4x256xf32>
    %7 = arith.subf %1, %6 : vector<4x256xf32>
    %8 = math.exp %7 : vector<4x256xf32>
    %cst_5 = arith.constant dense<0.000000e+00> : vector<256xf32>
    %9 = vector.multi_reduction <add>, %8, %cst_5 [0] : vector<4x256xf32> to vector<256xf32>
    %10 = vector.shape_cast %9 : vector<256xf32> to vector<1x256xf32>
    %11 = tpu.reciprocal %10 {approx = true} : vector<1x256xf32> -> vector<1x256xf32>
    %12 = vector.broadcast %11 : vector<1x256xf32> to vector<4x256xf32>
    %13 = arith.mulf %8, %12 : vector<4x256xf32>
    %14 = arith.mulf %13, %3 : vector<4x256xf32>
    %cst_6 = arith.constant dense<0.000000e+00> : vector<4xf32>
    %15 = vector.multi_reduction <add>, %14, %cst_6 [1] : vector<4x256xf32> to vector<4xf32>
    %16 = vector.shape_cast %15 : vector<4xf32> to vector<4x1xf32>
    %c0_7 = arith.constant 0 : index
    %c0_8 = arith.constant 0 : index
    %c0_9 = arith.constant 0 : index
    %c0_10 = arith.constant 0 : index
    %17 = vector.load %arg4[%c0_7, %c0_8, %c0_9, %c0_10] : memref<1x1x4x1xf32, #tpu.memory_space<vmem>>, vector<1x1x4x1xf32>
    %18 = vector.shape_cast %17 : vector<1x1x4x1xf32> to vector<4x1xf32>
    %19 = vector.shape_cast %16 : vector<4x1xf32> to vector<1x1x4x1xf32>
    tpu.vector_store %arg4[%c0_7, %c0_8, %c0_9, %c0_10], %19 {strides = array<i32>} : memref<1x1x4x1xf32, #tpu.memory_space<vmem>>, vector<1x1x4x1xf32>,
    %cst_11 = arith.constant dense<0.000000e+00> : vector<4xf32>
    %20 = vector.multi_reduction <add>, %13, %cst_11 [1] : vector<4x256xf32> to vector<4xf32>
    %21 = vector.shape_cast %20 : vector<4xf32> to vector<4x1xf32>
    %cst_12 = arith.constant dense<0.000000e+00> : vector<4xf32>
    %22 = vector.multi_reduction <add>, %3, %cst_12 [1] : vector<4x256xf32> to vector<4xf32>
    %23 = vector.shape_cast %22 : vector<4xf32> to vector<4x1xf32>
    %24 = arith.addf %21, %23 : vector<4x1xf32>
    %c0_13 = arith.constant 0 : index
    %c0_14 = arith.constant 0 : index
    %c0_15 = arith.constant 0 : index
    %c0_16 = arith.constant 0 : index
    %25 = vector.load %arg5[%c0_13, %c0_14, %c0_15, %c0_16] : memref<1x1x4x1xf32, #tpu.memory_space<vmem>>, vector<1x1x4x1xf32>
    %26 = vector.shape_cast %25 : vector<1x1x4x1xf32> to vector<4x1xf32>
    %27 = vector.shape_cast %24 : vector<4x1xf32> to vector<1x1x4x1xf32>
    tpu.vector_store %arg5[%c0_13, %c0_14, %c0_15, %c0_16], %27 {strides = array<i32>} : memref<1x1x4x1xf32, #tpu.memory_space<vmem>>, vector<1x1x4x1xf32>,
    return
  }
  func.func @transform_0(%arg0: i32, %arg1: i32) -> (i32, i32, i32) {
    %c0_i32 = arith.constant 0 : i32
    %c0_i32_0 = arith.constant 0 : i32
    return %arg0, %c0_i32, %arg1 : i32, i32, i32
  }
  func.func @transform_1(%arg0: i32, %arg1: i32) -> (i32, i32, i32) {
    %c0_i32 = arith.constant 0 : i32
    %c0_i32_0 = arith.constant 0 : i32
    return %arg0, %c0_i32, %arg1 : i32, i32, i32
  }
  func.func @transform_2(%arg0: i32, %arg1: i32) -> (i32, i32, i32, i32) {
    %c0_i32 = arith.constant 0 : i32
    %c0_i32_0 = arith.constant 0 : i32
    %c0_i32_1 = arith.constant 0 : i32
    return %arg0, %arg1, %c0_i32, %c0_i32_0 : i32, i32, i32, i32
  }
  func.func @transform_3(%arg0: i32, %arg1: i32) -> (i32, i32, i32, i32) {
    %c0_i32 = arith.constant 0 : i32
    %c0_i32_0 = arith.constant 0 : i32
    %c0_i32_1 = arith.constant 0 : i32
    return %arg0, %arg1, %c0_i32, %c0_i32_0 : i32, i32, i32, i32
  }
}

</mosaic_0001>

<bundles_post_ra>
// kernel: dice_loss.1
= control target key start
LH: loop header
LB: loop body
LE: loop exit
PB: predicated region body
PF: predicated region fallthrough
CT: control target
= control target key end

     0   :  { %s567_s12 = smov 0   ;;  %s569_s13 = smov 0   ;;  %s624_s0 = inlined_call_operand.vmem [shape: f32[2,4,256], index: 0, kind: input, shape index: {}]   ;;  %s625_s1 = inlined_call_operand.vmem [shape: f32[2,4,256], index: 1, kind: input, shape index: {}]   ;;  %s626_s2 = inlined_call_operand.vmem [shape: f32[2,1,4,1], index: 2, kind: output, shape index: {0}]   ;;  %s627_s3 = inlined_call_operand.vmem [shape: f32[2,1,4,1], index: 3, kind: output, shape index: {1}]  }
   0x1   :  { %s571_s14 = smov 0  }
   0x2 LB: > { %s26_s15 = sadd.s32 1, %s541_s13  ;;  %p480_p0 = scmp.ge.s32.totalorder %s545_s14, 1  ;;  %s545_s14 = sphi %s571_s14, %s14_s14   ;;  %s541_s13 = sphi %s569_s13, %s629_s13   ;;  %s537_s12 = sphi %s567_s12, %s628_s12  }
   0x3   : > { %p28_p1 = scmp.ge.s32.totalorder %s26_s15, 2  ;;  %p180_p2 = scmp.lt.s32.totalorder %s545_s14, 3 }
   0x5   : > { %s631_s15 = smov (%p28_p1, %s26_s15), 0  ;;  %p181_p3 = pnand %p480_p0, %p180_p2 }
   0x6   : > { %p227_p4 = scmp.lt.s32.totalorder (!%p181_p3), %s537_s12, 1 }
   0x7   : > { %184 = sbr.rel (%p181_p3) target bundleno = 234 (0xea), region = 28 }
   0xc   : > { %s633_s12 = smov (!%p227_p4, %s537_s12), 1  ;;  %vm265_vm0 = vcmask 1043456   ;;  %vm320_vm1 = vcmask 3072  }
   0xd   : > { %s489_s16 = sshll.u32 %s633_s12, 3  ;;  %s485_s23 = sshll.u32 %s633_s12, 2 }
   0xe   : > { %s234_s19 = scalar_lea.vmem %s624_s0, %s489_s16  ;;  %s244_s22 = scalar_lea.vmem %s625_s1, %s489_s16 }
   0xf   : > { %v260_v0 = vld [vmem:[%s234_s19] sm:$0xff]  ;;  %s252_s26 = scalar_lea.vmem %s626_s2, %s485_s23  ;;  %s259_s29 = scalar_lea.vmem %s627_s3, %s485_s23 }
  0x10   : > { %v263_v1 = vcombine.high %v260_v0, %v260_v0  ;;  %v266_v2 = vsel %vm265_vm0, %v260_v0, -inf  ;;  %v261_v37 = vld [vmem:[%s244_s22] sm:$0xff] }
  0x11   : > { %v267_v3 = vrot.slane %v266_v2, 4  ;;  %v331_v40 = vcombine.high %v261_v37, %v261_v37  ;;  %v333_v44 = vsel %vm265_vm0, %v261_v37, 0.0 }
  0x12   : > { %v273_v4 = vsel %vm265_vm0, %v263_v1, -inf }
  0x13   : > { %v268_v5 = vmax.f32 %v266_v2, %v267_v3  ;;  %v274_v6 = vrot.slane %v273_v4, 4  ;;  %v334_v46 = vsel %vm265_vm0, %v331_v40, 0.0 }
  0x14   : > { %v335_v51 = vadd.f32 %v334_v46, %v333_v44 }
  0x15   : > { %v269_v7 = vrot.slane %v268_v5, 2  ;;  %v275_v8 = vmax.f32 %v273_v4, %v274_v6 }
  0x17   : > { %v270_v9 = vmax.f32 %v268_v5, %v269_v7  ;;  %v276_v10 = vrot.slane %v275_v8, 2 }
  0x19   : > { %v271_v11 = vrot.slane %v270_v9, 1  ;;  %v277_v12 = vmax.f32 %v275_v8, %v276_v10 }
  0x1b   : > { %v272_v13 = vmax.f32 %v270_v9, %v271_v11  ;;  %v278_v14 = vrot.slane %v277_v12, 1 }
  0x1d   : > { %v279_v15 = vmax.f32 %v277_v12, %v278_v14 }
  0x1f   : > { %v282_v16 = vcombine.low %v272_v13, %v279_v15 }
  0x21   : > { %v284_v17 = vsub.f32 %v260_v0, %v282_v16 }
  0x23   : > { %v285_v18 = vmul.f32 1.442695, %v284_v17 }
  0x25   : > { %517 = vpow2.f32 %v285_v18 }
  0x32   : > { %v518_v19 = vpop.eup %517 }
  0x33   : > { %v288_v20 = vcombine.high %v518_v19, %v518_v19  ;;  %v290_v21 = vsel %vm265_vm0, %v518_v19, 0.0 }
  0x34   : > { %v291_v22 = vrot.slane %v290_v21, 4 }
  0x35   : > { %v297_v23 = vsel %vm265_vm0, %v288_v20, 0.0 }
  0x36   : > { %v292_v24 = vadd.f32 %v291_v22, %v290_v21  ;;  %v298_v25 = vrot.slane %v297_v23, 4 }
  0x38   : > { %v293_v26 = vrot.slane %v292_v24, 2  ;;  %v299_v27 = vadd.f32 %v298_v25, %v297_v23 }
  0x3a   : > { %v294_v28 = vadd.f32 %v293_v26, %v292_v24  ;;  %v300_v29 = vrot.slane %v299_v27, 2 }
  0x3c   : > { %v295_v30 = vrot.slane %v294_v28, 1  ;;  %v301_v31 = vadd.f32 %v300_v29, %v299_v27 }
  0x3e   : > { %v296_v32 = vadd.f32 %v295_v30, %v294_v28  ;;  %v302_v33 = vrot.slane %v301_v31, 1 }
  0x40   : > { %v303_v34 = vadd.f32 %v302_v33, %v301_v31  ;;  %519 = vrcp.f32 %v296_v32 }
  0x42   : > { %521 = vrcp.f32 %v303_v34 }
  0x4d   : > { %v520_v35 = vpop.eup %519 }
  0x4f   : > { %v522_v36 = vpop.eup %521 }
  0x50   : > { %v308_v38 = vcombine.low %v520_v35, %v522_v36 }
  0x52   : > { %v310_v39 = vmul.f32 %v518_v19, %v308_v38 }
  0x54   : > { %v323_v41 = vcombine.high %v310_v39, %v310_v39  ;;  %v325_v42 = vsel %vm265_vm0, %v310_v39, 0.0  ;;  %v311_v43 = vmul.f32 %v310_v39, %v261_v37 }
  0x56   : > { %v326_v45 = vsel %vm265_vm0, %v323_v41, 0.0  ;;  %v313_v47 = vcombine.high %v311_v43, %v311_v43  ;;  %v315_v48 = vsel %vm265_vm0, %v311_v43, 0.0 }
  0x57   : > { %v327_v49 = vadd.f32 %v326_v45, %v325_v42 }
  0x58   : > { %v316_v50 = vsel %vm265_vm0, %v313_v47, 0.0 }
  0x59   : > { %328 = vadd.xlane.f32.xlu0 %v327_v49  ;;  %v317_v52 = vadd.f32 %v316_v50, %v315_v48 }
  0x5b   : > { %318 = vadd.xlane.f32.xlu1 %v317_v52 }
  0x5d   : > { %336 = vadd.xlane.f32.xlu0 %v335_v51 }
  0xe2   : > { %v329_v53 = vpop.xlane.xlu0 %328 }
  0xe4   : > { %v319_v54 = vpop.xlane.xlu1 %318 }
  0xe5   : > { %321 = vst.msk [vmem:[%s252_s26] sm:$0xf] %vm320_vm1, %v319_v54 }
  0xe6   : > { %v337_v55 = vpop.xlane.xlu0 %336 }
  0xe7   : > { %v338_v56 = vadd.f32 %v337_v55, %v329_v53 }
  0xe9   : > { %339 = vst.msk [vmem:[%s259_s29] sm:$0xf] %vm320_vm1, %v338_v56 }
  0xea PF: > { %s14_s14 = sadd.s32 1, %s545_s14   ;;  %s628_s12 = smov %s541_s13 }
  0xeb   : > { %p11_p5 = scmp.ge.s32.totalorder %s14_s14, 4   ;;  %s629_s13 = smov %s631_s15 }
  0xed   :  { %13 = sbr.rel (!%p11_p5) target bundleno = 2 (0x2), region = 73 }

</bundles_post_ra>
